<compile_context>
chip_gen: v7x
topology: tpu7x:2x2x1
jax: 0.10.0
libtpu: 0.0.40
codegen_flags: <defaults>
</compile_context>

<pallas_src>
import math

import jax
import jax.numpy as jnp
from jax.experimental import pallas as pl
from jax.experimental.pallas import tpu as pltpu

_MIB = 1024 * 1024
_LANES = 128


def _identity_kernel(x_ref, o_ref):
    # Elementwise pass-through on the current VMEM tile (pure DMA/VPU copy).
    o_ref[...] = x_ref[...]


def _cdiv(a: int, b: int) -> int:
    return -(-a // b)


def _sublane_multiple(itemsize: int) -> int:
    # 32-bit dtypes tile 8 rows per vreg; bf16 -> 16, int8/fp8 -> 32.
    return max(8, (8 * 4) // max(int(itemsize), 1))


def _padded_block_bytes(block_shape, itemsize: int) -> int:
    """Physical VMEM bytes of one block, honoring (sublane, 128) tile padding."""
    if len(block_shape) == 0:
        return 4 * 8 * _LANES
    sub = _sublane_multiple(itemsize)
    if len(block_shape) == 1:
        lead, second, last = 1, 1, block_shape[0]
    else:
        second, last = block_shape[-2], block_shape[-1]
        lead = math.prod(block_shape[:-2]) if len(block_shape) > 2 else 1
    last_p = _cdiv(last, _LANES) * _LANES
    second_p = _cdiv(second, sub) * sub
    return int(lead * second_p * last_p * max(itemsize, 1))


def _vmem_capacity_bytes() -> int:
    try:
        cap = int(pltpu.get_tpu_info().vmem_capacity_bytes)
        if cap > 0:
            return cap
    except Exception:
        pass
    return 64 * _MIB  # conservative: v7x per-TensorCore VMEM


def agent_forward(x: jnp.ndarray) -> jnp.ndarray:
    """Identity forward of the abstract Agent, via a Pallas TPU copy kernel.

    Accepts any shape/dtype (e.g. NCHW, matching the PyTorch calling
    convention) and returns identical shape, dtype and values.
    """
    shape = tuple(x.shape)
    dtype = x.dtype
    itemsize = int(jnp.dtype(dtype).itemsize)
    total_elems = math.prod(shape) if shape else 1
    total_bytes = total_elems * itemsize

    if total_elems == 0:
        return x  # nothing to copy

    vmem_cap = _vmem_capacity_bytes()
    # Per-block physical budget: ~8 MiB on 128-MiB-VMEM parts (v5e/v6e),
    # ~5 MiB on v7x (64 MiB / TC).  The 2 input + 2 output double buffers then
    # use <= ~vmem_cap/3, leaving ample headroom.
    block_budget = max(_MIB, min(8 * _MIB, vmem_cap // 12))
    sub = _sublane_multiple(itemsize)

    if total_elems % _LANES == 0:
        # Lane-dense 2-D view of the contiguous buffer (metadata-only reshape,
        # no extra HBM pass).  cols is a multiple of 128, so blocks have no
        # layout padding and every store is an unmasked full-width vst.
        m = total_elems // _LANES
        c = 1
        for cand in (128, 64, 32, 16, 8, 4, 2, 1):
            if m % cand == 0:
                c = cand
                break
        cols = _LANES * c                      # <= 16384 elems per row
        rows = total_elems // cols
        x2 = jnp.reshape(x, (rows, cols))

        row_bytes = cols * itemsize            # lane-dense: physical == logical
        block_rows = min(rows, max(1, block_budget // row_bytes))
        if block_rows < rows:
            # Keep blocks sublane-aligned (full vreg rows, unmasked stores).
            block_rows = max(sub, (block_rows // sub) * sub)
        elif rows >= 2 * sub:
            # Whole array fits one block: still split into >=2 grid steps so
            # v7x's second TensorCore shares the "parallel" copy for free.
            block_rows = _cdiv(_cdiv(rows, 2), sub) * sub

        grid = (pl.cdiv(rows, block_rows),)    # ragged last block handled by Pallas
        block_shape = (block_rows, cols)
        index_map = lambda i: (i, 0)
        block_phys = _padded_block_bytes(block_shape, itemsize)
    else:
        # Rare path: element count not a multiple of 128 (realistic NCHW inputs
        # essentially never hit this).  Use the native shape with *physical*
        # (padded) VMEM accounting.
        x2 = jnp.reshape(x, (1, total_elems)) if len(shape) < 2 else x
        rank = len(x2.shape)
        full_phys = _padded_block_bytes(tuple(x2.shape), itemsize)
        if full_phys <= block_budget:
            block_shape = tuple(x2.shape)
            grid = (1,)
            index_map = lambda i: (0,) * rank
        else:
            lead = x2.shape[0]
            slice_phys = _padded_block_bytes((1,) + tuple(x2.shape[1:]), itemsize)
            bn = max(1, min(lead, block_budget // max(slice_phys, 1)))
            if rank == 2 and bn < lead:
                bn = max(sub, (bn // sub) * sub)   # second-to-last dim (8,128) rule
            # TODO(synk): if a single leading slice already exceeds the budget
            # (bn == 1, slice_phys > block_budget) this block is oversized and
            # would need second-axis tiling; the module's NCHW usage (totals
            # divisible by 128) never reaches this branch.
            block_shape = (bn,) + tuple(x2.shape[1:])
            grid = (pl.cdiv(lead, bn),)
            index_map = lambda i: (i,) + (0,) * (rank - 1)
        block_phys = _padded_block_bytes(block_shape, itemsize)

    # Scoped-VMEM limit: comfortably above the 4 double-buffered blocks, but
    # below physical VMEM (v7x: 64 MiB/TC) so compilation never OOMs.
    vmem_limit = max(4 * block_phys + 16 * _MIB, 32 * _MIB)
    vmem_limit = min(vmem_limit, vmem_cap - 16 * _MIB)
    vmem_limit = max(vmem_limit, 16 * _MIB)

    y2 = pl.pallas_call(
        _identity_kernel,
        out_shape=jax.ShapeDtypeStruct(x2.shape, dtype),
        grid=grid,
        in_specs=[pl.BlockSpec(block_shape, index_map)],
        out_specs=pl.BlockSpec(block_shape, index_map),
        compiler_params=pltpu.CompilerParams(
            dimension_semantics=("parallel",),
            vmem_limit_bytes=int(vmem_limit),
        ),
        cost_estimate=pl.CostEstimate(
            flops=0, transcendentals=0, bytes_accessed=2 * total_bytes),
    )(x2)

    return jnp.reshape(y2, shape)


if __name__ == "__main__":
    key = jax.random.PRNGKey(0)
    # Small NCHW input consistent with the module's calling convention.
    x = jax.random.normal(key, (2, 4, 16, 16), dtype=jnp.float32)

    y = agent_forward(x)
    y = jax.block_until_ready(y)

    # Verify the abstract-Agent identity contract: shape/dtype/values preserved.
    assert y.shape == x.shape
    assert y.dtype == x.dtype
    assert bool(jnp.array_equal(y, x))

    print("KERNEL_OK")
</pallas_src>

<mosaic_0001>
module attributes {stable_mosaic.version = 11 : i64} {
  func.func @_identity_kernel(%arg0: i32, %arg1: memref<1x2048xf32, #tpu.memory_space<vmem>>, %arg2: memref<1x2048xf32, #tpu.memory_space<vmem>>) attributes {dimension_semantics = [#tpu.dimension_semantics<parallel>], iteration_bounds = array<i64: 1>, scalar_prefetch = 0 : i64, scratch_operands = 0 : i64, tpu.core_type = #tpu.core_type<tc>, window_params = [{transform_indices = @transform_0, window_bounds = array<i64: 1, 2048>}, {transform_indices = @transform_1, window_bounds = array<i64: 1, 2048>}]} {
    %c0 = arith.constant 0 : index
    %c0_0 = arith.constant 0 : index
    %0 = vector.load %arg1[%c0, %c0_0] : memref<1x2048xf32, #tpu.memory_space<vmem>>, vector<1x2048xf32>
    %c0_1 = arith.constant 0 : index
    %c0_2 = arith.constant 0 : index
    %1 = vector.load %arg2[%c0_1, %c0_2] : memref<1x2048xf32, #tpu.memory_space<vmem>>, vector<1x2048xf32>
    tpu.vector_store %arg2[%c0_1, %c0_2], %0 {strides = array<i32>} : memref<1x2048xf32, #tpu.memory_space<vmem>>, vector<1x2048xf32>,
    return
  }
  func.func @transform_0(%arg0: i32) -> (i32, i32) {
    %c0_i32 = arith.constant 0 : i32
    %c0_i32_0 = arith.constant 0 : i32
    return %arg0, %c0_i32 : i32, i32
  }
  func.func @transform_1(%arg0: i32) -> (i32, i32) {
    %c0_i32 = arith.constant 0 : i32
    %c0_i32_0 = arith.constant 0 : i32
    return %arg0, %c0_i32 : i32, i32
  }
}

</mosaic_0001>

<bundles_post_ra>
// kernel: tpu_custom_call.1
= control target key start
LH: loop header
LB: loop body
LE: loop exit
PB: predicated region body
PF: predicated region fallthrough
CT: control target
= control target key end

     0   :  { %6 = vsyncpa [#allocation3], 0  ;;  %s126_s0 = inlined_call_operand.hbm [shape: f32[1,2048], index: 0, kind: input, shape index: {}]   ;;  %s127_s1 = inlined_call_operand.hbm [shape: f32[1,2048], index: 1, kind: output, shape index: {}]  }
   0x1   :  { %7 = vsyncpa [#allocation4], 0  ;;  %s90_s6 = smov [#allocation2]   ;;  %s42_s10 = scalar_lea.hbm %s126_s0, 256 }
   0x2   :  { %s14_s7 = sshll.u32 %s90_s6, 4  ;;  %p43_p0 = scmp.ne.s32.totalorder %s126_s0, %s42_s10  ;;  %s15_s7 = int_to_ptr.vmem [resolvable:$true] %s14_s7 }
   0x3   :  { %p46_p1 = scmp.lt.u32.totalorder %s42_s10, %s126_s0 }
   0x5   :  { %p48_p2 = pnand %p46_p1, %p43_p0 }
   0x7   :  { %51 = shalt.err (!%p48_p2)
}
   0x8   :  { %s52_s15 = scalar_lea.vmem %s15_s7, 256  ;;  %p57_p4 = scmp.lt.s32.totalorder %s15_s7, %s15_s7 }
   0x9   :  { %p53_p3 = scmp.ne.s32.totalorder %s15_s7, %s52_s15  ;;  %p58_p5 = scmp.lt.s32.totalorder %s52_s15, %s52_s15 }
   0xb   :  { %p59_p6 = por %p58_p5, %p57_p4 }
   0xd   :  { %p60_p7 = pnand %p59_p6, %p53_p3 }
   0xf   :  { %63 = shalt.err (!%p60_p7)
}
  0x10   :  { %17 = dma.hbm_to_vmem [thread:$0]  %s126_s0, 256, %s15_s7, [#allocation3]  }
  0x11   :  { %86 = dma.done.wait [#allocation3], 256  }
  0x12   :  { %87 = vsyncadd [#allocation3], 4294967040  ;;  %s91_s18 = smov [#allocation5]   ;;  %v21_v0 = vld [vmem:[#allocation2] sm:$0xff]  ;;  %v22_v1 = vld [vmem:[#allocation2 + $0x8] sm:$0xff] }
  0x13   :  { %s31_s19 = sshll.u32 %s91_s18, 4  ;;  %23 = vst [vmem:[#allocation5] sm:$0xff] %v21_v0  ;;  %24 = vst [vmem:[#allocation5 + $0x8] sm:$0xff] %v22_v1  ;;  %s32_s19 = int_to_ptr.vmem [resolvable:$true] %s31_s19 }
  0x14   :  { %s64_s20 = scalar_lea.vmem %s32_s19, 256  ;;  %p69_p9 = scmp.lt.s32.totalorder %s32_s19, %s32_s19 }
  0x15   :  { %p65_p8 = scmp.ne.s32.totalorder %s32_s19, %s64_s20  ;;  %p70_p10 = scmp.lt.s32.totalorder %s64_s20, %s64_s20 }
  0x17   :  { %p71_p11 = por %p70_p10, %p69_p9 }
  0x19   :  { %p72_p12 = pnand %p71_p11, %p65_p8 }
  0x1b   :  { %75 = shalt.err (!%p72_p12)
}
  0x1c   :  { %s76_s0 = scalar_lea.hbm %s127_s1, 256 }
  0x1d   :  { %p77_p13 = scmp.ne.s32.totalorder %s127_s1, %s76_s0  ;;  %p80_p0 = scmp.lt.u32.totalorder %s76_s0, %s127_s1 }
  0x1f   :  { %p82_p1 = pnand %p80_p0, %p77_p13 }
  0x21   :  { %85 = shalt.err (!%p82_p1)
}
  0x22   :  { %34 = dma.vmem_to_hbm [thread:$0]  %s32_s19, 256, %s127_s1, [#allocation4]  }
  0x23   :  { %88 = dma.done.wait [#allocation4], 256  }
  0x24   :  { %89 = vsyncadd [#allocation4], 4294967040 }
  0x25   :  { %38 = vsyncpa [#allocation3], 1 }
  0x26   :  { %39 = vsyncpa [#allocation4], 1 }

</bundles_post_ra>
